<compile_context>
chip_gen: v5e
topology: v5e:2x2
jax: 0.10.0
libtpu: 0.0.40
codegen_flags: <defaults>
</compile_context>

<pallas_src>
import math

import jax
import jax.numpy as jnp
from jax.experimental import pallas as pl
from jax.experimental.pallas import tpu as pltpu


def ans_kernel(x_ref, adj_ref, w1_ref, w2_ref, o_ref):
    bb, n, in_p = x_ref.shape
    out_p = w2_ref.shape[1]

    x = x_ref[...]        # (bb, N, in_p)
    adj = adj_ref[...]    # (bb, N, N)
    w1 = w1_ref[...]      # (in_p, hid_p)
    w2 = w2_ref[...]      # (hid_p, out_p)

    # ---- gc1, reassociated: (adj @ x) @ W1  (in_p contraction is the cheap one)
    ax = jnp.einsum("bnm,bmi->bni", adj, x,
                    preferred_element_type=jnp.float32)          # (bb, N, in_p)
    # Fold batch into rows for the weight matmuls: fatter 2-D MXU ops.
    ax2d = ax.reshape(bb * n, in_p)
    h2d = jnp.maximum(
        jnp.dot(ax2d, w1, preferred_element_type=jnp.float32), 0.0)  # (bb*N, hid_p)
    # dropout: identity in eval mode.

    # ---- gc2: adj @ (h @ W2)  (out_p contraction result is the narrow one)
    hw2d = jnp.dot(h2d, w2, preferred_element_type=jnp.float32)      # (bb*N, out_p)
    hw = hw2d.reshape(bb, n, out_p)
    y = jnp.einsum("bnm,bmo->bno", adj, hw,
                   preferred_element_type=jnp.float32)           # (bb, N, out_p)

    # ---- log_softmax over the node axis (PyTorch dim=1).
    # Padded feature columns of y are exactly zero; softmax is per-feature
    # column over nodes, so they never mix with real columns (sliced off in
    # the wrapper).
    m = jnp.max(y, axis=1, keepdims=True)
    z = y - m
    lse = jnp.log(jnp.sum(jnp.exp(z), axis=1, keepdims=True))
    o_ref[...] = (z - lse).astype(o_ref.dtype)


def _round_up(v, m):
    return (v + m - 1) // m * m


def ans_forward(x, adj, w1, w2, *, batch_block=None):
    B, N, in_dim = x.shape
    in_w1, hid_dim = w1.shape
    hid_w2, out_dim = w2.shape
    assert in_w1 == in_dim and hid_w2 == hid_dim

    LANE = 128
    in_p = _round_up(in_dim, LANE)
    hid_p = _round_up(hid_dim, LANE)
    out_p = _round_up(out_dim, LANE)

    # Zero-padding the feature dims to lane width is exact:
    #  - padded x columns multiply padded (zero) W1 rows -> no contribution;
    #  - padded W1 columns make padded h columns 0, relu(0)=0, and the matching
    #    padded W2 rows are zero -> no contribution;
    #  - padded W2 columns make padded y columns 0; log_softmax is independent
    #    per feature column, so the padding never corrupts real columns.
    # N (node axis) is NOT padded, so the node-axis log_softmax needs no mask.
    xp = jnp.pad(x, ((0, 0), (0, 0), (0, in_p - in_dim)))
    w1p = jnp.pad(w1, ((0, in_p - in_dim), (0, hid_p - hid_dim)))
    w2p = jnp.pad(w2, ((0, hid_p - hid_dim), (0, out_p - out_dim)))

    if batch_block is None:
        # Keep two grid steps when B allows it so a parallel batch axis can be
        # split across the 2 TensorCores on v7x; on single-TC chips the second
        # step only adds ~0.35us of per-step overhead.
        batch_block = B // 2 if (B % 2 == 0 and B >= 2) else B
    assert B % batch_block == 0, "batch_block must divide B"
    steps = B // batch_block

    # Advisory cost hint for XLA's scheduler (microsecond-scale kernel).
    flops = 2 * B * N * (N * in_p + in_p * hid_p + hid_p * out_p + N * out_p)
    bytes_accessed = 4 * (xp.size + adj.size + w1p.size + w2p.size + B * N * out_p)
    cost = pl.CostEstimate(flops=flops,
                           transcendentals=B * N * out_p,
                           bytes_accessed=bytes_accessed)

    # NOTE: for realistic graph sizes (N in the thousands) the (batch_block,N,N)
    # adj block is double-buffered in VMEM; raise vmem_limit_bytes / tile the
    # contraction axis if N grows (v7x has only 64 MiB VMEM). Irrelevant here.
    out = pl.pallas_call(
        ans_kernel,
        out_shape=jax.ShapeDtypeStruct((B, N, out_p), jnp.float32),
        grid_spec=pltpu.PrefetchScalarGridSpec(
            num_scalar_prefetch=0,
            grid=(steps,),
            in_specs=[
                pl.BlockSpec((batch_block, N, in_p), lambda b: (b, 0, 0)),
                pl.BlockSpec((batch_block, N, N), lambda b: (b, 0, 0)),
                # Weights map to block (0,0) every step -> stay resident.
                pl.BlockSpec((in_p, hid_p), lambda b: (0, 0)),
                pl.BlockSpec((hid_p, out_p), lambda b: (0, 0)),
            ],
            out_specs=pl.BlockSpec((batch_block, N, out_p), lambda b: (b, 0, 0)),
        ),
        compiler_params=pltpu.CompilerParams(
            dimension_semantics=("parallel",),
        ),
        cost_estimate=cost,
    )(xp, adj, w1p, w2p)

    return out[..., :out_dim]


def ans_reference(x, adj, w1, w2):
    """Pure-JAX reference of the same forward pass (original association order)."""
    tmp = jnp.einsum("bnm,bmh->bnh", adj, jnp.einsum("bni,ih->bnh", x, w1))
    h = jax.nn.relu(tmp)
    y = jnp.einsum("bnm,bmo->bno", adj, jnp.einsum("bnh,ho->bno", h, w2))
    return jax.nn.log_softmax(y, axis=1)


if __name__ == "__main__":
    # Small shapes consistent with the module:
    # B subjects, N ROI nodes, in/hid/out feature dims.
    B, N = 2, 16
    in_dim, hid_dim, out_dim = 8, 32, 4
    dropout = 0.5  # unused in eval-mode forward

    key = jax.random.PRNGKey(0)
    kx, kadj, kw1, kw2 = jax.random.split(key, 4)

    x = jax.random.normal(kx, (B, N, in_dim), dtype=jnp.float32)
    # symmetric-ish adjacency with self loops
    a = jax.random.uniform(kadj, (B, N, N), dtype=jnp.float32)
    adj = 0.5 * (a + jnp.transpose(a, (0, 2, 1))) + jnp.eye(N, dtype=jnp.float32)

    # Deterministic parameter init mirroring GraphConvolution.reset_parameters:
    # uniform(-stdv, stdv) with stdv = 1/sqrt(out_features). Bias exists in the
    # module but is never used in forward, so it is omitted here.
    stdv1 = 1.0 / math.sqrt(hid_dim)
    stdv2 = 1.0 / math.sqrt(out_dim)
    w1 = jax.random.uniform(kw1, (in_dim, hid_dim), jnp.float32, -stdv1, stdv1)
    w2 = jax.random.uniform(kw2, (hid_dim, out_dim), jnp.float32, -stdv2, stdv2)

    out = ans_forward(x, adj, w1, w2)
    out = jax.block_until_ready(out)

    ref = ans_reference(x, adj, w1, w2)
    assert out.shape == (B, N, out_dim)
    # Tolerance allows for the (mathematically exact) layer-1 matmul
    # reassociation, which slightly changes f32 rounding vs. the reference.
    assert jnp.allclose(out, ref, atol=5e-4, rtol=5e-4), "mismatch vs reference"

    print("KERNEL_OK")
</pallas_src>

<mosaic_0001>
module attributes {stable_mosaic.version = 11 : i64} {
  func.func @ans_kernel(%arg0: i32, %arg1: memref<1x16x128xf32, #tpu.memory_space<vmem>>, %arg2: memref<1x16x16xf32, #tpu.memory_space<vmem>>, %arg3: memref<128x128xf32, #tpu.memory_space<vmem>>, %arg4: memref<128x128xf32, #tpu.memory_space<vmem>>, %arg5: memref<1x16x128xf32, #tpu.memory_space<vmem>>) attributes {dimension_semantics = [#tpu.dimension_semantics<parallel>], iteration_bounds = array<i64: 2>, scalar_prefetch = 0 : i64, scratch_operands = 0 : i64, tpu.core_type = #tpu.core_type<tc>, window_params = [{transform_indices = @transform_0, window_bounds = array<i64: 1, 16, 128>}, {transform_indices = @transform_1, window_bounds = array<i64: 1, 16, 16>}, {pipeline_mode = #tpu.pipeline_mode<synchronous>, transform_indices = @transform_2, window_bounds = array<i64: 128, 128>}, {pipeline_mode = #tpu.pipeline_mode<synchronous>, transform_indices = @transform_3, window_bounds = array<i64: 128, 128>}, {transform_indices = @transform_4, window_bounds = array<i64: 1, 16, 128>}]} {
    %c0 = arith.constant 0 : index
    %c0_0 = arith.constant 0 : index
    %c0_1 = arith.constant 0 : index
    %0 = vector.load %arg1[%c0, %c0_0, %c0_1] : memref<1x16x128xf32, #tpu.memory_space<vmem>>, vector<1x16x128xf32>
    %c0_2 = arith.constant 0 : index
    %c0_3 = arith.constant 0 : index
    %c0_4 = arith.constant 0 : index
    %1 = vector.load %arg2[%c0_2, %c0_3, %c0_4] : memref<1x16x16xf32, #tpu.memory_space<vmem>>, vector<1x16x16xf32>
    %c0_5 = arith.constant 0 : index
    %c0_6 = arith.constant 0 : index
    %2 = vector.load %arg3[%c0_5, %c0_6] : memref<128x128xf32, #tpu.memory_space<vmem>>, vector<128x128xf32>
    %c0_7 = arith.constant 0 : index
    %c0_8 = arith.constant 0 : index
    %3 = vector.load %arg4[%c0_7, %c0_8] : memref<128x128xf32, #tpu.memory_space<vmem>>, vector<128x128xf32>
    "tpu.trace_start"() <{level = 10 : i32, message = "bnm,bmi->bni"}> : () -> ()
    %cst = arith.constant dense<0.000000e+00> : vector<1x16x128xf32>
    %4 = tpu.matmul %1, %0, %cst {dimension_numbers = #tpu.dot_dimension_numbers<[2], [1], [1], [2], [0, 0, 0, 1, 1, 2], [0], [0]>} : vector<1x16x16xf32>, vector<1x16x128xf32>, vector<1x16x128xf32> -> vector<1x16x128xf32>
    "tpu.trace_stop"() : () -> ()
    %5 = vector.shape_cast %4 : vector<1x16x128xf32> to vector<16x128xf32>
    %cst_9 = arith.constant dense<0.000000e+00> : vector<16x128xf32>
    %6 = tpu.matmul %5, %2, %cst_9 {dimension_numbers = #tpu.dot_dimension_numbers<[1], [0], [0], [1], [0, 0, 1, 1], [], []>} : vector<16x128xf32>, vector<128x128xf32>, vector<16x128xf32> -> vector<16x128xf32>
    %cst_10 = arith.constant 0.000000e+00 : f32
    %7 = vector.broadcast %cst_10 : f32 to vector<16x128xf32>
    %8 = arith.maximumf %6, %7 : vector<16x128xf32>
    %cst_11 = arith.constant dense<0.000000e+00> : vector<16x128xf32>
    %9 = tpu.matmul %8, %3, %cst_11 {dimension_numbers = #tpu.dot_dimension_numbers<[1], [0], [0], [1], [0, 0, 1, 1], [], []>} : vector<16x128xf32>, vector<128x128xf32>, vector<16x128xf32> -> vector<16x128xf32>
    %10 = vector.shape_cast %9 : vector<16x128xf32> to vector<1x16x128xf32>
    "tpu.trace_start"() <{level = 10 : i32, message = "bnm,bmo->bno"}> : () -> ()
    %cst_12 = arith.constant dense<0.000000e+00> : vector<1x16x128xf32>
    %11 = tpu.matmul %1, %10, %cst_12 {dimension_numbers = #tpu.dot_dimension_numbers<[2], [1], [1], [2], [0, 0, 0, 1, 1, 2], [0], [0]>} : vector<1x16x16xf32>, vector<1x16x128xf32>, vector<1x16x128xf32> -> vector<1x16x128xf32>
    "tpu.trace_stop"() : () -> ()
    %cst_13 = arith.constant dense<0xFF800000> : vector<1x128xf32>
    %12 = vector.multi_reduction <maximumf>, %11, %cst_13 [1] : vector<1x16x128xf32> to vector<1x128xf32>
    %13 = vector.shape_cast %12 : vector<1x128xf32> to vector<1x1x128xf32>
    %14 = vector.broadcast %13 : vector<1x1x128xf32> to vector<1x16x128xf32>
    %15 = arith.subf %11, %14 : vector<1x16x128xf32>
    %16 = math.exp %15 : vector<1x16x128xf32>
    %cst_14 = arith.constant dense<0.000000e+00> : vector<1x128xf32>
    %17 = vector.multi_reduction <add>, %16, %cst_14 [1] : vector<1x16x128xf32> to vector<1x128xf32>
    %18 = vector.shape_cast %17 : vector<1x128xf32> to vector<1x1x128xf32>
    %19 = math.log %18 : vector<1x1x128xf32>
    %20 = vector.broadcast %19 : vector<1x1x128xf32> to vector<1x16x128xf32>
    %21 = arith.subf %15, %20 : vector<1x16x128xf32>
    %c0_15 = arith.constant 0 : index
    %c0_16 = arith.constant 0 : index
    %c0_17 = arith.constant 0 : index
    %22 = vector.load %arg5[%c0_15, %c0_16, %c0_17] : memref<1x16x128xf32, #tpu.memory_space<vmem>>, vector<1x16x128xf32>
    tpu.vector_store %arg5[%c0_15, %c0_16, %c0_17], %21 {strides = array<i32>} : memref<1x16x128xf32, #tpu.memory_space<vmem>>, vector<1x16x128xf32>,
    return
  }
  func.func @transform_0(%arg0: i32) -> (i32, i32, i32) {
    %c0_i32 = arith.constant 0 : i32
    %c0_i32_0 = arith.constant 0 : i32
    %c0_i32_1 = arith.constant 0 : i32
    return %arg0, %c0_i32, %c0_i32_0 : i32, i32, i32
  }
  func.func @transform_1(%arg0: i32) -> (i32, i32, i32) {
    %c0_i32 = arith.constant 0 : i32
    %c0_i32_0 = arith.constant 0 : i32
    %c0_i32_1 = arith.constant 0 : i32
    return %arg0, %c0_i32, %c0_i32_0 : i32, i32, i32
  }
  func.func @transform_2(%arg0: i32) -> (i32, i32) {
    %c0_i32 = arith.constant 0 : i32
    %c0_i32_0 = arith.constant 0 : i32
    %c0_i32_1 = arith.constant 0 : i32
    return %c0_i32, %c0_i32_0 : i32, i32
  }
  func.func @transform_3(%arg0: i32) -> (i32, i32) {
    %c0_i32 = arith.constant 0 : i32
    %c0_i32_0 = arith.constant 0 : i32
    %c0_i32_1 = arith.constant 0 : i32
    return %c0_i32, %c0_i32_0 : i32, i32
  }
  func.func @transform_4(%arg0: i32) -> (i32, i32, i32) {
    %c0_i32 = arith.constant 0 : i32
    %c0_i32_0 = arith.constant 0 : i32
    %c0_i32_1 = arith.constant 0 : i32
    return %arg0, %c0_i32, %c0_i32_0 : i32, i32, i32
  }
}

</mosaic_0001>

<bundles_post_ra>
// kernel: tpu_custom_call.1
= control target key start
LH: loop header
LB: loop body
LE: loop exit
PB: predicated region body
PF: predicated region fallthrough
CT: control target
= control target key end

     0   :  { %s1146_s0 = inlined_call_operand.hbm [shape: f32[2,16,128], index: 0, kind: input, shape index: {}]   ;;  %s1147_s1 = inlined_call_operand.hbm [shape: f32[2,16,16], index: 1, kind: input, shape index: {}]   ;;  %s1148_s2 = inlined_call_operand.hbm [shape: f32[128,128], index: 2, kind: input, shape index: {}]   ;;  %s1149_s3 = inlined_call_operand.hbm [shape: f32[128,128], index: 3, kind: input, shape index: {}]   ;;  %s1150_s4 = inlined_call_operand.hbm [shape: f32[2,16,128], index: 4, kind: output, shape index: {}]  }
   0x1   :  { %1155 = sst [smem:[#allocation16_spill]] %s1146_s0 }
   0x2   :  { %1156 = sst [smem:[#allocation17_spill]] %s1148_s2 }
   0x3   :  { %1157 = sst [smem:[#allocation18_spill]] %s1149_s3 }
   0x4   :  { %9 = vsyncpa [#allocation3], 0 }
   0x5   :  { %11 = vsyncpa [#allocation3 + $0x1], 0 }
   0x6   :  { %12 = vsyncpa [#allocation6], 0 }
   0x7   :  { %14 = vsyncpa [#allocation6 + $0x1], 0 }
   0x8   :  { %15 = vsyncpa [#allocation9], 0 }
   0x9   :  { %16 = vsyncpa [#allocation4], 0 }
   0xa   :  { %18 = vsyncpa [#allocation4 + $0x1], 0  ;;  %s945_s15 = smov 0   ;;  %s947_s16 = smov 0  }
   0xb   :  { %s949_s17 = smov 0   ;;  %s951_s18 = smov 0  }
   0xc LB: > { %s966_s19 = sadd.s32 4294967295, %s912_s18   ;;  %s587_s20 = sadd.s32 4294967294, %s912_s18   ;;  %s912_s18 = sphi %s951_s18, %s1172_s18   ;;  %s908_s17 = sphi %s949_s17, %s1171_s17   ;;  %s904_s16 = sphi %s947_s16, %s1170_s16   ;;  %s900_s15 = sphi %s945_s15, %s1169_s15  }
   0xd   : > { %p44_p0 = scmp.ne.s32.totalorder %s904_s16, %s900_s15  ;;  %p45_p1 = scmp.eq.s32.totalorder %s966_s19, 0 }
   0xe   : > { %p136_p2 = scmp.eq.s32.totalorder %s966_s19, 1  ;;  %p142_p3 = scmp.eq.s32.totalorder %s587_s20, 1 }
   0xf   : > { %p975_p4 = por %p45_p1, %p44_p0  ;;  %p588_p5 = scmp.ge.s32.totalorder %s912_s18, 1 }
  0x10   : > { %p980_p6 = por %p142_p3, %p44_p0  ;;  %p149_p7 = scmp.lt.s32.totalorder %s912_s18, 3 }
  0x11   : > { %s1160_s2 = sld [smem:[#allocation17_spill]]  ;;  %s914_s27 = smov [#allocation7]  }
  0x12   : > { %p988_p8 = pnand %p588_p5, %p149_p7  ;;  %s162_s28 = sshll.u32 %s914_s27, 4  ;;  %s163_s28 = int_to_ptr.vmem [resolvable:$true] %s162_s28 }
  0x13   : > { %s1162_s3 = sld [smem:[#allocation18_spill]]  ;;  %s1151_s6 = smov 128  }
  0x14   : > { %p646_p9 = pneg %p988_p8  ;;  %s1153_s7 = smov 8  }
  0x15   : > { %s917_s8 = smov [#allocation8]   ;;  %s1007_s10 = sadd.s32 1, %s912_s18  }
  0x16   : > { %p647_p10 = pnand %p646_p9, %p45_p1  ;;  %s176_s9 = sshll.u32 %s917_s8, 4  ;;  %s177_s9 = int_to_ptr.vmem [resolvable:$true] %s176_s9 }
  0x17   : > { %s160_s25 = sshll.u32 %s1160_s2, 4  ;;  %s31_s11 = sadd.s32 1, %s908_s17  ;;  %s161_s25 = int_to_ptr.hbm [resolvable:$true] %s160_s25 }
  0x18   : > { %649 = dma.hbm_to_vmem [thread:$0]  (!%p647_p10), %s161_s25, 2048, %s163_s28, [#allocation6], %s1151_s6, %s1151_s6, %s1153_s7  }
  0x19   : > { %s174_s5 = sshll.u32 %s1162_s3, 4  ;;  %s28_s12 = ssub.s32 %s912_s18, %s1007_s10  ;;  %s175_s5 = int_to_ptr.hbm [resolvable:$true] %s174_s5 }
  0x1a   : > { %652 = dma.hbm_to_vmem [thread:$0]  (!%p647_p10), %s175_s5, 2048, %s177_s9, [#allocation9], %s1151_s6, %s1151_s6, %s1153_s7  }
  0x1b   : > { %p38_p12 = scmp.ne.s32.totalorder %s908_s17, %s904_s16  ;;  %p29_p13 = scmp.eq.s32.totalorder %s28_s12, 0 }
  0x1c   : > { %p39_p0 = scmp.eq.s32.totalorder %s912_s18, 0  ;;  %p666_p5 = scmp.lt.s32.totalorder %s912_s18, 2 }
  0x1d   : > { %p1017_p3 = por %p136_p2, %p38_p12  ;;  %s190_s20 = sand.u32 1, %s908_s17  }
  0x1e   : > { %s1023_s14 = scalar_select %p29_p13, %s908_s17, %s31_s11  }
  0x1f   : > { %p40_p7 = por %p39_p0, %p38_p12  ;;  %s1026_s23 = sshll.u32 %s190_s20, 4 }
  0x20   : > { %s613_s24 = sshll.u32 %s912_s18, 4  ;;  %s1164_s0 = sld [smem:[#allocation16_spill]] }
  0x21   : > { %s194_s29 = scalar_lea.vmem [#allocation2], %s1026_s23  ;;  %p1033_p2 = pnand %p666_p5, %p40_p7 }
  0x22   : > { %s202_s30 = sshll.u32 %s194_s29, 4  ;;  %s221_s12 = scalar_lea.hbm %s1147_s1, %s613_s24  ;;  %s203_s30 = int_to_ptr.vmem [resolvable:$true] %s202_s30 }
  0x23   : > { %s222_s6 = sshll.u32 %s221_s12, 4  ;;  %s191_s7 = scalar_lea.sflag [#allocation3], %s190_s20  ;;  %s223_s6 = int_to_ptr.hbm [resolvable:$true] %s222_s6 }
  0x24   : > { %p778_p10 = pneg %p1033_p2 }
  0x26   : > { %s199_s28 = scalar_lea.hbm %s1164_s0, %s613_s24  ;;  %s781_s29 = scalar_lea.hbm %s1164_s0, 32 }
  0x27   : > { %s200_s5 = sshll.u32 %s199_s28, 4  ;;  %s201_s5 = int_to_ptr.hbm [resolvable:$true] %s200_s5 }
  0x28   : > { %s774_s2 = sshra.s32 %s201_s5, 4  ;;  %s775_s2 = int_to_ptr.hbm [resolvable:$true] %s774_s2 }
  0x29   : > { %s776_s25 = scalar_lea.hbm %s775_s2, 16  ;;  %p782_p0 = scmp.lt.s32.totalorder %s775_s2, %s1164_s0 }
  0x2a   : > { %p777_p9 = scmp.ne.s32.totalorder %s775_s2, %s776_s25  ;;  %p783_p5 = scmp.lt.s32.totalorder %s781_s29, %s776_s25 }
  0x2c   : > { %p779_p12 = pnand %p778_p10, %p777_p9  ;;  %p784_p7 = por %p783_p5, %p782_p0 }
  0x2e   : > { %p780_p13 = pneg %p779_p12 }
  0x30   : > { %p785_p11 = pnand %p784_p7, %p780_p13 }
  0x32   : > { %788 = shalt.err (!%p785_p11)
}
  0x33   : > { %s1166_s20 = smov 8   ;;  %s1167_s24 = smov 128  }
  0x34   : > { %656 = dma.hbm_to_vmem [thread:$0]  (!%p1033_p2), %s201_s5, 256, %s203_s30, %s191_s7, %s1167_s24, %s1167_s24, %s1166_s20  }
  0x35   : > { %s216_s12 = scalar_lea.vmem [#allocation5], %s1026_s23  ;;  %s212_s28 = sand.u32 1, %s912_s18  }
  0x36   : > { %s224_s27 = sshll.u32 %s216_s12, 4  ;;  %s213_s9 = scalar_lea.sflag [#allocation6], %s212_s28  ;;  %s225_s27 = int_to_ptr.vmem [resolvable:$true] %s224_s27 }
  0x37   : > { %s804_s2 = sshra.s32 %s223_s6, 4  ;;  %s811_s0 = scalar_lea.hbm %s1147_s1, 32  ;;  %s805_s2 = int_to_ptr.hbm [resolvable:$true] %s804_s2 }
  0x38   : > { %s806_s25 = scalar_lea.hbm %s805_s2, 16  ;;  %p812_p13 = scmp.lt.s32.totalorder %s805_s2, %s1147_s1 }
  0x39   : > { %p807_p9 = scmp.ne.s32.totalorder %s805_s2, %s806_s25  ;;  %p813_p0 = scmp.lt.s32.totalorder %s811_s0, %s806_s25 }
  0x3b   : > { %p809_p11 = pnand %p807_p9, %p778_p10  ;;  %p814_p5 = por %p813_p0, %p812_p13 }
  0x3d   : > { %p810_p12 = pneg %p809_p11 }
  0x3f   : > { %p815_p7 = pnand %p814_p5, %p810_p12 }
  0x41   : > { %818 = shalt.err (!%p815_p7)
}
  0x42   : > { %659 = dma.hbm_to_vmem [thread:$0]  (!%p1033_p2), %s223_s6, 256, %s225_s27, %s213_s9, %s1167_s24, %s1167_s24, %s1166_s20  }
  0x43   : > { %236 = sbr.rel (%p988_p8) target bundleno = 677 (0x2a5), region = 36  ;;  %s1075_s23 = sand.u32 (!%p988_p8), 1, %s904_s16  }
  0x44   : > { %s1078_s3 = sshll.u32 (!%p988_p8), %s1075_s23, 4  ;;  %s239_s0 = scalar_lea.sflag (!%p988_p8), [#allocation3], %s1075_s23 }
  0x45   : > { %s242_s30 = scalar_lea.vmem (!%p988_p8), [#allocation2], %s1078_s3 }
  0x48   : > { %879 = dma.done.wait (%p975_p4), %s239_s0, 256  }
  0x49   : > { %881 = vsyncadd (%p975_p4), %s239_s0, 4294967040  ;;  %s248_s26 = sand.u32 1, %s966_s19   ;;  %s252_s5 = scalar_lea.vmem [#allocation5], %s1078_s3 }
  0x4a   : > { %s249_s6 = scalar_lea.sflag [#allocation6], %s248_s26 }
  0x4b   : > { %883 = dma.done.wait (%p975_p4), %s249_s6, 256  }
  0x4c   : > { %885 = vsyncadd (%p975_p4), %s249_s6, 4294967040 }
  0x4d   : > { %887 = dma.done.wait (%p45_p1), [#allocation6], 2048  }
  0x4e   : > { %889 = vsyncadd (%p45_p1), [#allocation6], 4294965248 }
  0x4f   : > { %891 = dma.done.wait (%p45_p1), [#allocation9], 2048  }
  0x50   : > { %893 = vsyncadd (%p45_p1), [#allocation9], 4294965248  ;;  %v294_v0 = vld [vmem:[%s242_s30 + $0x8] sm:$0xff]  ;;  %v293_v1 = vld [vmem:[%s242_s30] sm:$0xff]  ;;  %vm329_vm0 = vcmask 130048   ;;  %s615_s21 = sshll.u32 %s966_s19, 4 }
  0x51   : > { %350 = vmatpush.msra.mxu0 %v294_v0  ;;  %v1100_v2 = vld [vmem:[%s252_s5] sm:$0xff]  ;;  %v312_v3 = vld [vmem:[#allocation7 + $0x78] sm:$0xff]  ;;  %v310_v5 = vld [vmem:[#allocation7 + $0x68] sm:$0xff]  ;;  %s468_s24 = scalar_lea.hbm %s1150_s4, %s615_s21  ;;  %s292_s12 = scalar_lea.vmem [#allocation10], %s1078_s3 }
  0x52   : > { %616 = vmatpush.msra.mxu1 %v312_v3  ;;  %v311_v4 = vld [vmem:[#allocation7 + $0x70] sm:$0xff]  ;;  %v309_v6 = vld [vmem:[#allocation7 + $0x60] sm:$0xff]  ;;  %v1104_v7 = vld [vmem:[%s252_s5 + $0x8] sm:$0xff]  ;;  %s469_s27 = sshll.u32 %s292_s12, 4  ;;  %s471_s28 = sshll.u32 %s468_s24, 4  ;;  %s470_s27 = int_to_ptr.vmem [resolvable:$true] %s469_s27  ;;  %s472_s28 = int_to_ptr.hbm [resolvable:$true] %s471_s28 }
  0x53   : > { %351 = vmatpush.msra.mxu0 %v293_v1  ;;  %v308_v8 = vld [vmem:[#allocation7 + $0x58] sm:$0xff]  ;;  %v307_v9 = vld [vmem:[#allocation7 + $0x50] sm:$0xff]  ;;  %v306_v10 = vld [vmem:[#allocation7 + $0x48] sm:$0xff]  ;;  %s457_s9 = scalar_lea.sflag [#allocation4], %s1075_s23  ;;  %s848_s2 = sshra.s32 %s472_s28, 4  ;;  %s849_s2 = int_to_ptr.hbm [resolvable:$true] %s848_s2 }
  0x54   : > { %604 = vmatmul.msk.f32.vlgmr.msra.gmra.mxu0 %vm329_vm0, %v1100_v2  ;;  %617 = vmatpush.msra.mxu1 %v311_v4  ;;  %v305_v11 = vld [vmem:[#allocation7 + $0x40] sm:$0xff]  ;;  %v304_v12 = vld [vmem:[#allocation7 + $0x38] sm:$0xff]  ;;  %v303_v13 = vld [vmem:[#allocation7 + $0x30] sm:$0xff]  ;;  %s850_s19 = scalar_lea.hbm %s849_s2, 16  ;;  %s854_s11 = scalar_lea.hbm %s1150_s4, 32 }
  0x55   : > { %359 = vmatpush.msrb.mxu0 %v312_v3  ;;  %v302_v14 = vld [vmem:[#allocation7 + $0x28] sm:$0xff]  ;;  %v301_v15 = vld [vmem:[#allocation7 + $0x20] sm:$0xff]  ;;  %v300_v16 = vld [vmem:[#allocation7 + $0x18] sm:$0xff]  ;;  %p851_p1 = scmp.ne.s32.totalorder %s849_s2, %s850_s19  ;;  %p855_p2 = scmp.lt.s32.totalorder %s849_s2, %s1150_s4 }
  0x56   : > { %618 = vmatpush.msra.mxu1 %v310_v5  ;;  %v299_v17 = vld [vmem:[#allocation7 + $0x10] sm:$0xff]  ;;  %v298_v18 = vld [vmem:[#allocation7 + $0x8] sm:$0xff]  ;;  %v297_v19 = vld [vmem:[#allocation7] sm:$0xff]  ;;  %p856_p10 = scmp.lt.s32.totalorder %s854_s11, %s850_s19 }
  0x57   : > { %360 = vmatpush.msrb.mxu0 %v311_v4  ;;  %v328_v20 = vld [vmem:[#allocation8 + $0x78] sm:$0xff]  ;;  %v327_v21 = vld [vmem:[#allocation8 + $0x70] sm:$0xff]  ;;  %v326_v22 = vld [vmem:[#allocation8 + $0x68] sm:$0xff]  ;;  %p852_p4 = pnand %p851_p1, %p1017_p3 }
  0x58   : > { %619 = vmatpush.msra.mxu1 %v309_v6  ;;  %384 = vmatpush.msra.mxu2 %v328_v20  ;;  %v325_v23 = vld [vmem:[#allocation8 + $0x60] sm:$0xff]  ;;  %v324_v24 = vld [vmem:[#allocation8 + $0x58] sm:$0xff]  ;;  %v323_v25 = vld [vmem:[#allocation8 + $0x50] sm:$0xff]  ;;  %p857_p9 = por %p856_p10, %p855_p2 }
  0x59   : > { %361 = vmatpush.msrb.mxu0 %v310_v5  ;;  %v322_v26 = vld [vmem:[#allocation8 + $0x48] sm:$0xff]  ;;  %v321_v27 = vld [vmem:[#allocation8 + $0x40] sm:$0xff]  ;;  %v320_v28 = vld [vmem:[#allocation8 + $0x38] sm:$0xff]  ;;  %p853_p8 = pneg %p852_p4 }
  0x5a   : > { %620 = vmatpush.msra.mxu1 %v308_v8  ;;  %385 = vmatpush.msra.mxu2 %v327_v21  ;;  %v319_v29 = vld [vmem:[#allocation8 + $0x30] sm:$0xff]  ;;  %v318_v30 = vld [vmem:[#allocation8 + $0x28] sm:$0xff]  ;;  %v317_v31 = vld [vmem:[#allocation8 + $0x20] sm:$0xff] }
  0x5b   : > { %362 = vmatpush.msrb.mxu0 %v309_v6  ;;  %v316_v32 = vld [vmem:[#allocation8 + $0x18] sm:$0xff]  ;;  %v315_v34 = vld [vmem:[#allocation8 + $0x10] sm:$0xff]  ;;  %v314_v36 = vld [vmem:[#allocation8 + $0x8] sm:$0xff]  ;;  %p858_p11 = pnand %p857_p9, %p853_p8 }
  0x5c   : > { %605 = vmatmul.msk.f32.gmra.mxu0 %vm329_vm0, %v1104_v7  ;;  %621 = vmatpush.msra.mxu1 %v307_v9  ;;  %v313_v37 = vld [vmem:[#allocation8] sm:$0xff] }
  0x5d   : > { %363 = vmatpush.msrb.mxu0 %v308_v8  ;;  %386 = vmatpush.msra.mxu2 %v326_v22 }
  0x5e   : > { %622 = vmatpush.msra.mxu1 %v306_v10 }
  0x5f   : > { %364 = vmatpush.msrb.mxu0 %v307_v9  ;;  %387 = vmatpush.msra.mxu2 %v325_v23 }
  0x60   : > { %623 = vmatpush.msra.mxu1 %v305_v11 }
  0x61   : > { %365 = vmatpush.msrb.mxu0 %v306_v10  ;;  %388 = vmatpush.msra.mxu2 %v324_v24 }
  0x62   : > { %624 = vmatpush.msra.mxu1 %v304_v12 }
  0x63   : > { %366 = vmatpush.msrb.mxu0 %v305_v11  ;;  %389 = vmatpush.msra.mxu2 %v323_v25 }
  0x64   : > { %625 = vmatpush.msra.mxu1 %v303_v13 }
  0x65   : > { %367 = vmatpush.msrb.mxu0 %v304_v12  ;;  %390 = vmatpush.msra.mxu2 %v322_v26 }
  0x66   : > { %626 = vmatpush.msra.mxu1 %v302_v14 }
  0x67   : > { %368 = vmatpush.msrb.mxu0 %v303_v13  ;;  %391 = vmatpush.msra.mxu2 %v321_v27 }
  0x68   : > { %627 = vmatpush.msra.mxu1 %v301_v15 }
  0x69   : > { %369 = vmatpush.msrb.mxu0 %v302_v14  ;;  %392 = vmatpush.msra.mxu2 %v320_v28 }
  0x6a   : > { %628 = vmatpush.msra.mxu1 %v300_v16 }
  0x6b   : > { %370 = vmatpush.msrb.mxu0 %v301_v15  ;;  %393 = vmatpush.msra.mxu2 %v319_v29 }
  0x6c   : > { %629 = vmatpush.msra.mxu1 %v299_v17 }
  0x6d   : > { %371 = vmatpush.msrb.mxu0 %v300_v16  ;;  %394 = vmatpush.msra.mxu2 %v318_v30 }
  0x6e   : > { %630 = vmatpush.msra.mxu1 %v298_v18 }
  0x6f   : > { %372 = vmatpush.msrb.mxu0 %v299_v17  ;;  %395 = vmatpush.msra.mxu2 %v317_v31 }
  0x70   : > { %631 = vmatpush.msra.mxu1 %v297_v19 }
  0x71   : > { %373 = vmatpush.msrb.mxu0 %v298_v18  ;;  %396 = vmatpush.msra.mxu2 %v316_v32 }
  0x73   : > { %374 = vmatpush.msrb.mxu0 %v297_v19  ;;  %397 = vmatpush.msra.mxu2 %v315_v34 }
  0x75   : > { %398 = vmatpush.msra.mxu2 %v314_v36 }
  0x77   : > { %399 = vmatpush.msra.mxu2 %v313_v37 }
  0xd1   : > { %v353_v33 = vpop.f32.mrf.mxu0 }
  0xd2   : > { %375 = vmatmul.f32.vlgmr.msrb.gmra.mxu0 %v353_v33 }
  0xd9   : > { %v356_v35 = vpop.f32.mrf.mxu0 }
  0xda   : > { %378 = vmatmul.f32.vlgmr.msra.gmra.mxu1 %v356_v35 }
 0x14f   : > { %v376_v38 = vpop.f32.mrf.mxu0 }
 0x150   : > { %v382_v39 = vmax.f32 %v376_v38, 0.0 }
 0x152   : > { %400 = vmatmul.f32.vlgmr.msra.gmra.mxu2 %v382_v39 }
 0x157   : > { %v379_v40 = vpop.f32.mrf.mxu1 }
 0x158   : > { %v383_v41 = vmax.f32 %v379_v40, 0.0 }
 0x15a   : > { %403 = vmatmul.f32.gmra.mxu2 %v383_v41 }
 0x1d5   : > { %v401_v42 = vpop.f32.mrf.mxu2 }
 0x1dd   : > { %v404_v43 = vpop.f32.mrf.mxu2 }
 0x1de   : > { %421 = vmatpush.msra.mxu3 %v404_v43 }
 0x1e0   : > { %422 = vmatpush.msra.mxu3 %v401_v42 }
 0x1e1   : > { %606 = vmatmul.msk.f32.vlgmr.msra.gmra.mxu3 %vm329_vm0, %v1100_v2 }
 0x1e9   : > { %607 = vmatmul.msk.f32.gmra.mxu3 %vm329_vm0, %v1104_v7 }
 0x264   : > { %v424_v44 = vpop.f32.mrf.mxu3 }
 0x26c   : > { %v427_v45 = vpop.f32.mrf.mxu3 }
 0x26d   : > { %v430_v46 = vmax.f32 %v424_v44, %v427_v45 }
 0x26f   : > { %v431_v47 = vrot.slane %v430_v46, 4 }
 0x271   : > { %v432_v48 = vmax.f32 %v430_v46, %v431_v47 }
 0x273   : > { %v433_v49 = vrot.slane %v432_v48, 2 }
 0x275   : > { %v434_v50 = vmax.f32 %v432_v48, %v433_v49 }
 0x277   : > { %v435_v51 = vrot.slane %v434_v50, 1 }
 0x279   : > { %v436_v52 = vmax.f32 %v434_v50, %v435_v51 }
 0x27b   : > { %v437_v53 = vsub.f32 %v424_v44, %v436_v52  ;;  %v438_v54 = vsub.f32 %v427_v45, %v436_v52 }
 0x27d   : > { %v439_v55 = vmul.f32 1.442695, %v437_v53  ;;  %v441_v56 = vmul.f32 1.442695, %v438_v54 }
 0x27f   : > { %708 = vpow2.f32 %v439_v55 }
 0x280   : > { %710 = vpow2.f32 %v441_v56 }
 0x285   : > { %v709_v57 = vpop.eup %708 }
 0x286   : > { %v711_v58 = vpop.eup %710 }
 0x287   : > { %v443_v59 = vadd.f32 %v711_v58, %v709_v57 }
 0x289   : > { %v444_v60 = vrot.slane %v443_v59, 4 }
 0x28b   : > { %v445_v61 = vadd.f32 %v444_v60, %v443_v59 }
 0x28d   : > { %v446_v62 = vrot.slane %v445_v61, 2 }
 0x28f   : > { %v447_v63 = vadd.f32 %v446_v62, %v445_v61 }
 0x291   : > { %v448_v0 = vrot.slane %v447_v63, 1 }
 0x293   : > { %v449_v1 = vadd.f32 %v448_v0, %v447_v63 }
 0x295   : > { %712 = vlog2.f32 %v449_v1 }
 0x29b   : > { %v713_v2 = vpop.eup %712 }
 0x29c   : > { %v451_v3 = vmul.f32 0.6931472, %v713_v2 }
 0x29e   : > { %v452_v4 = vsub.f32 %v437_v53, %v451_v3  ;;  %v453_v5 = vsub.f32 %v438_v54, %v451_v3 }
 0x2a0   : > { %454 = vst [vmem:[%s292_s12] sm:$0xff] %v452_v4 }
 0x2a1   : > { %455 = vst [vmem:[%s292_s12 + $0x8] sm:$0xff] %v453_v5 }
 0x2a2   : > { %861 = shalt.err (!%p858_p11)
}
 0x2a3   : > { %s918_s23 = smov 128   ;;  %s919_s0 = smov 8  }
 0x2a4   : > { %644 = dma.vmem_to_hbm [thread:$0]  (%p1017_p3), %s470_s27, 256, %s472_s28, %s457_s9, %s918_s23, %s918_s23, %s919_s0  }
 0x2a5 PF: > { %s486_s30 = sand.u32 1, %s900_s15   ;;  %p1168_p12 = scmp.ge.s32.totalorder %s912_s18, 2 }
 0x2a6   : > { %s487_s26 = scalar_lea.sflag [#allocation4], %s486_s30 }
 0x2a7   : > { %p661_p13 = pnand %p1168_p12, %p980_p6 }
 0x2a9   : > { %p662_p0 = pneg %p661_p13 }
 0x2ab   : > { %895 = dma.done.wait (%p662_p0), %s487_s26, 256  }
 0x2ac   : > { %897 = vsyncadd (%p662_p0), %s487_s26, 4294967040  ;;  %p21_p5 = scmp.ge.s32.totalorder %s1007_s10, 4   ;;  %s1169_s15 = smov %s904_s16 }
 0x2ad   : > { %s1170_s16 = smov %s908_s17  ;;  %s1171_s17 = smov %s1023_s14 }
 0x2ae   : > { %s1172_s18 = smov %s1007_s10  ;;  %23 = sbr.rel (!%p21_p5) target bundleno = 12 (0xc), region = 102 }
 0x2b3   :  { %493 = vsyncpa [#allocation3], 1 }
 0x2b4   :  { %495 = vsyncpa [#allocation3 + $0x1], 1 }
 0x2b5   :  { %496 = vsyncpa [#allocation6], 1 }
 0x2b6   :  { %498 = vsyncpa [#allocation6 + $0x1], 1 }
 0x2b7   :  { %499 = vsyncpa [#allocation9], 1 }
 0x2b8   :  { %500 = vsyncpa [#allocation4], 1 }
 0x2b9   :  { %502 = vsyncpa [#allocation4 + $0x1], 1 }

</bundles_post_ra>
